<compile_context>
chip_gen: v7x
topology: tpu7x:2x2x1
jax: 0.10.0
libtpu: 0.0.40
codegen_flags: <defaults>
</compile_context>

<pallas_src>
import jax
import jax.numpy as jnp
from jax.experimental import pallas as pl
from jax.experimental.pallas import tpu as pltpu


def _round_up(x, m):
    return ((x + m - 1) // m) * m


def linear_kernel(x_ref, w_ref, b_ref, o_ref):
    """One (tm, N) output tile: full-K X row tile @ resident W^T, f32 acc + f32 bias."""
    # In-kernel activation cast (f32 -> bf16): VPU work hidden under the MXU, so X only
    # crosses HBM once as f32 instead of f32-read + bf16-write + bf16-re-read.
    x = x_ref[...].astype(w_ref.dtype)
    acc = jnp.dot(x, w_ref[...], preferred_element_type=jnp.float32)
    o_ref[...] = (acc + b_ref[...]).astype(o_ref.dtype)


def image_encoder_init_params(w, b, *, compute_dtype=jnp.bfloat16):
    """One-time parameter prep (NOT repeated per forward call).

    w: PyTorch-shaped (n_feature_dim, 2048) f32; b: (n_feature_dim,) f32.
    Returns (w_t, bias2d): persisted (2048, n_feature_dim) compute-dtype weight and
    (1, n_feature_dim) f32 bias.
    """
    n_feature_dim, _ = w.shape
    w_t = jnp.asarray(w.T, dtype=compute_dtype)                 # (K, N), done once
    bias2d = jnp.asarray(b, dtype=jnp.float32).reshape(1, n_feature_dim)
    return w_t, bias2d


def image_encoder_project(x2d, w_t, bias2d, *, tm=256, out_dtype=jnp.float32):
    """x2d: (M, K) f32 activations; w_t: (K, N) bf16 resident weight; bias2d: (1, N) f32.

    Returns (M, N) out_dtype.
    """
    M, K = x2d.shape
    Kw, N = w_t.shape
    assert K == Kw, (K, Kw)

    # Output/lane tile: full N (n_feature_dim is a multiple of 128 in practice; if it is
    # ever not, the full-dim block still compiles, stores just become lane-masked).
    tn = N

    # Size the M tile to the real work: 16-row granularity (bf16 sublane pack), capped at
    # tm for large M.  No explicit jnp.pad; pl.cdiv + Pallas masking handle a partial
    # last block, so small M (e.g. B*R = 16) no longer pays a 128-row DMA/MXU tile.
    tm_eff = min(tm, _round_up(max(M, 1), 16))
    grid = (pl.cdiv(M, tm_eff), N // tn)

    # Explicit VMEM budget (v7x: 64 MiB physical / 32 MiB default scoped).  X and out
    # tiles are double-buffered; W^T and bias are grid-invariant and single-buffered.
    x_bytes = 2 * tm_eff * K * x2d.dtype.itemsize
    w_bytes = 1 * K * tn * w_t.dtype.itemsize
    b_bytes = 1 * tn * 4
    o_bytes = 2 * tm_eff * tn * jnp.dtype(out_dtype).itemsize
    vmem_limit = int(min(max(2 * (x_bytes + w_bytes + b_bytes + o_bytes),
                             32 * 1024 * 1024),
                         100 * 1024 * 1024))

    cost = pl.CostEstimate(
        flops=2 * M * K * N,
        transcendentals=0,
        bytes_accessed=(M * K * x2d.dtype.itemsize
                        + K * N * w_t.dtype.itemsize
                        + N * 4
                        + M * N * jnp.dtype(out_dtype).itemsize),
    )

    return pl.pallas_call(
        linear_kernel,
        out_shape=jax.ShapeDtypeStruct((M, N), out_dtype),
        grid_spec=pltpu.PrefetchScalarGridSpec(
            num_scalar_prefetch=0,
            grid=grid,
            in_specs=[
                # X row tile with the full K extent (K reduction collapsed: one MXU shot,
                # no accumulator scratch / init-finalize).
                pl.BlockSpec((tm_eff, K), lambda i, j: (i, 0)),
                # W^T: grid-invariant -> DMA'd once and held resident; single-buffered
                # (second buffer is dead VMEM; matters at large n_feature_dim on v7x).
                pl.BlockSpec((K, tn), lambda i, j: (0, j),
                             pipeline_mode=pl.Buffered(1)),
                # Bias: grid-invariant, single-buffered.
                pl.BlockSpec((1, tn), lambda i, j: (0, j),
                             pipeline_mode=pl.Buffered(1)),
            ],
            out_specs=pl.BlockSpec((tm_eff, tn), lambda i, j: (i, j)),
        ),
        compiler_params=pltpu.CompilerParams(
            # Independent output tiles: megacore (v7x) shards M tiles across TensorCores
            # once M yields >= 2 tiles (at the toy size the grid is (1, 1)).
            dimension_semantics=("parallel", "parallel"),
            vmem_limit_bytes=vmem_limit,
        ),
        cost_estimate=cost,
    )(x2d, w_t, bias2d)


def image_encoder_forward(region_feats, w_t, bias2d, *, tm=256, out_dtype=jnp.float32):
    """region_feats: (B, R, 2048) f32; (w_t, bias2d) from image_encoder_init_params."""
    B, R, K = region_feats.shape
    Kw, N = w_t.shape
    assert K == Kw
    x2d = region_feats.reshape(B * R, K)
    out2d = image_encoder_project(x2d, w_t, bias2d, tm=tm, out_dtype=out_dtype)
    return out2d.reshape(B, R, N)


if __name__ == "__main__":
    # Module config: Linear(2048, n_feature_dim) over region features; small batch.
    B, R = 2, 8
    IN_DIM = 2048
    N_FEATURE_DIM = 128

    key = jax.random.PRNGKey(0)
    kx, kw = jax.random.split(key)

    region_feats = jax.random.normal(kx, (B, R, IN_DIM), dtype=jnp.float32)

    # init_weights: xavier_uniform_ on weight (PyTorch shape (out, in)), bias = 0.
    bound = float(jnp.sqrt(6.0 / (IN_DIM + N_FEATURE_DIM)))
    w = jax.random.uniform(
        kw, (N_FEATURE_DIM, IN_DIM), dtype=jnp.float32, minval=-bound, maxval=bound
    )
    b = jnp.zeros((N_FEATURE_DIM,), dtype=jnp.float32)

    # One-time parameter prep (persisted bf16 W^T + f32 bias); not repeated per call.
    w_t, bias2d = image_encoder_init_params(w, b)

    out = image_encoder_forward(region_feats, w_t, bias2d)
    out = jax.block_until_ready(out)

    assert out.shape == (B, R, N_FEATURE_DIM)

    # Tight check against a matched bf16-operand / f32-accumulate reference.
    ref_bf16 = (
        jnp.dot(
            region_feats.reshape(B * R, IN_DIM).astype(jnp.bfloat16),
            w.T.astype(jnp.bfloat16),
            preferred_element_type=jnp.float32,
        )
        + b
    ).reshape(B, R, N_FEATURE_DIM)
    assert jnp.allclose(out, ref_bf16, atol=1e-3, rtol=1e-3)

    # Loose check against the full-f32 reference (bf16 operand rounding only).
    ref_f32 = region_feats @ w.T + b
    assert jnp.allclose(out, ref_f32, atol=5e-2, rtol=5e-2)

    print("KERNEL_OK")
</pallas_src>

<mosaic_0001>
module attributes {stable_mosaic.version = 11 : i64} {
  func.func @linear_kernel(%arg0: i32, %arg1: i32, %arg2: memref<16x2048xf32, #tpu.memory_space<vmem>>, %arg3: memref<2048x128xbf16, #tpu.memory_space<vmem>>, %arg4: memref<1x128xf32, #tpu.memory_space<vmem>>, %arg5: memref<16x128xf32, #tpu.memory_space<vmem>>) attributes {dimension_semantics = [#tpu.dimension_semantics<parallel>, #tpu.dimension_semantics<parallel>], iteration_bounds = array<i64: 1, 1>, scalar_prefetch = 0 : i64, scratch_operands = 0 : i64, tpu.core_type = #tpu.core_type<tc>, window_params = [{transform_indices = @transform_0, window_bounds = array<i64: 16, 2048>}, {pipeline_mode = #tpu.pipeline_mode<synchronous>, transform_indices = @transform_1, window_bounds = array<i64: 2048, 128>}, {pipeline_mode = #tpu.pipeline_mode<synchronous>, transform_indices = @transform_2, window_bounds = array<i64: 1, 128>}, {transform_indices = @transform_3, window_bounds = array<i64: 16, 128>}]} {
    %c0 = arith.constant 0 : index
    %c0_0 = arith.constant 0 : index
    %0 = vector.load %arg2[%c0, %c0_0] : memref<16x2048xf32, #tpu.memory_space<vmem>>, vector<16x2048xf32>
    %1 = arith.truncf %0 : vector<16x2048xf32> to vector<16x2048xbf16>
    %c0_1 = arith.constant 0 : index
    %c0_2 = arith.constant 0 : index
    %2 = vector.load %arg3[%c0_1, %c0_2] : memref<2048x128xbf16, #tpu.memory_space<vmem>>, vector<2048x128xbf16>
    %cst = arith.constant dense<0.000000e+00> : vector<16x128xf32>
    %3 = tpu.matmul %1, %2, %cst {dimension_numbers = #tpu.dot_dimension_numbers<[1], [0], [0], [1], [0, 0, 1, 1], [], []>} : vector<16x2048xbf16>, vector<2048x128xbf16>, vector<16x128xf32> -> vector<16x128xf32>
    %c0_3 = arith.constant 0 : index
    %c0_4 = arith.constant 0 : index
    %4 = vector.load %arg4[%c0_3, %c0_4] : memref<1x128xf32, #tpu.memory_space<vmem>>, vector<1x128xf32>
    %5 = vector.broadcast %4 : vector<1x128xf32> to vector<16x128xf32>
    %6 = arith.addf %3, %5 : vector<16x128xf32>
    %c0_5 = arith.constant 0 : index
    %c0_6 = arith.constant 0 : index
    %7 = vector.load %arg5[%c0_5, %c0_6] : memref<16x128xf32, #tpu.memory_space<vmem>>, vector<16x128xf32>
    tpu.vector_store %arg5[%c0_5, %c0_6], %6 {strides = array<i32>} : memref<16x128xf32, #tpu.memory_space<vmem>>, vector<16x128xf32>,
    return
  }
  func.func @transform_0(%arg0: i32, %arg1: i32) -> (i32, i32) {
    %c0_i32 = arith.constant 0 : i32
    %c0_i32_0 = arith.constant 0 : i32
    return %arg0, %c0_i32 : i32, i32
  }
  func.func @transform_1(%arg0: i32, %arg1: i32) -> (i32, i32) {
    %c0_i32 = arith.constant 0 : i32
    %c0_i32_0 = arith.constant 0 : i32
    return %c0_i32, %arg1 : i32, i32
  }
  func.func @transform_2(%arg0: i32, %arg1: i32) -> (i32, i32) {
    %c0_i32 = arith.constant 0 : i32
    %c0_i32_0 = arith.constant 0 : i32
    return %c0_i32, %arg1 : i32, i32
  }
  func.func @transform_3(%arg0: i32, %arg1: i32) -> (i32, i32) {
    %c0_i32 = arith.constant 0 : i32
    return %arg0, %arg1 : i32, i32
  }
}

</mosaic_0001>

<bundles_post_ra>
// kernel: tpu_custom_call.1
= control target key start
LH: loop header
LB: loop body
LE: loop exit
PB: predicated region body
PF: predicated region fallthrough
CT: control target
= control target key end

     0   :  { %8 = vsyncpa [#allocation3], 0  ;;  %s2054_s0 = inlined_call_operand.hbm [shape: f32[16,2048], index: 0, kind: input, shape index: {}]   ;;  %s2055_s1 = inlined_call_operand.hbm [shape: bf16[2048,128], index: 1, kind: input, shape index: {}]   ;;  %s2056_s2 = inlined_call_operand.vmem [shape: f32[1,128], index: 2, kind: input, shape index: {}]   ;;  %s2057_s3 = inlined_call_operand.hbm [shape: f32[16,128], index: 3, kind: output, shape index: {}]  }
   0x1   :  { %9 = vsyncpa [#allocation6], 0 }
   0x2   :  { %10 = vsyncpa [#allocation4], 0  ;;  %s1984_s12 = smov [#allocation2]   ;;  %s1912_s16 = scalar_lea.hbm %s2054_s0, 4096 }
   0x3   :  { %s16_s13 = sshll.u32 %s1984_s12, 4  ;;  %p1913_p0 = scmp.ne.s32.totalorder %s2054_s0, %s1912_s16  ;;  %s17_s13 = int_to_ptr.vmem [resolvable:$true] %s16_s13 }
   0x4   :  { %p1916_p1 = scmp.lt.u32.totalorder %s1912_s16, %s2054_s0 }
   0x6   :  { %p1918_p2 = pnand %p1916_p1, %p1913_p0 }
   0x8   :  { %1921 = shalt.err (!%p1918_p2)
}
   0x9   :  { %s1922_s21 = scalar_lea.vmem %s17_s13, 4096  ;;  %p1927_p4 = scmp.lt.s32.totalorder %s17_s13, %s17_s13 }
   0xa   :  { %p1923_p3 = scmp.ne.s32.totalorder %s17_s13, %s1922_s21  ;;  %p1928_p5 = scmp.lt.s32.totalorder %s1922_s21, %s1922_s21 }
   0xc   :  { %p1929_p6 = por %p1928_p5, %p1927_p4 }
   0xe   :  { %p1930_p7 = pnand %p1929_p6, %p1923_p3 }
  0x10   :  { %1933 = shalt.err (!%p1930_p7)
}
  0x11   :  { %s1985_s22 = smov 2048   ;;  %s1986_s23 = smov 128  }
  0x12   :  { %22 = dma.hbm_to_vmem [thread:$0]  %s2054_s0, 4096, %s17_s13, [#allocation3], %s1985_s22, %s1985_s22, %s1986_s23  }
  0x13   :  { %s1987_s26 = smov [#allocation5]   ;;  %s1934_s30 = scalar_lea.hbm %s2055_s1, 16384 }
  0x14   :  { %s28_s27 = sshll.u32 %s1987_s26, 4  ;;  %p1935_p8 = scmp.ne.s32.totalorder %s2055_s1, %s1934_s30  ;;  %s29_s27 = int_to_ptr.vmem [resolvable:$true] %s28_s27 }
  0x15   :  { %p1938_p9 = scmp.lt.u32.totalorder %s1934_s30, %s2055_s1 }
  0x17   :  { %p1940_p10 = pnand %p1938_p9, %p1935_p8 }
  0x19   :  { %1943 = shalt.err (!%p1940_p10)
}
  0x1a   :  { %s1944_s8 = scalar_lea.vmem %s29_s27, 16384  ;;  %p1949_p12 = scmp.lt.s32.totalorder %s29_s27, %s29_s27 }
  0x1b   :  { %p1945_p11 = scmp.ne.s32.totalorder %s29_s27, %s1944_s8  ;;  %p1950_p13 = scmp.lt.s32.totalorder %s1944_s8, %s1944_s8 }
  0x1d   :  { %p1951_p0 = por %p1950_p13, %p1949_p12 }
  0x1f   :  { %p1952_p1 = pnand %p1951_p0, %p1945_p11 }
  0x21   :  { %1955 = shalt.err (!%p1952_p1)
}
  0x22   :  { %s1988_s0 = smov 64   ;;  %s1989_s9 = smov 4  }
  0x23   :  { %34 = dma.hbm_to_vmem [thread:$0]  %s2055_s1, 16384, %s29_s27, [#allocation6], %s1988_s0, %s1988_s0, %s1989_s9  }
  0x24   :  { %1978 = dma.done.wait [#allocation3], 4096  }
  0x25   :  { %1979 = vsyncadd [#allocation3], 4294963200 }
  0x26   :  { %1980 = dma.done.wait [#allocation6], 16384  }
  0x27   :  { %1981 = vsyncadd [#allocation6], 4294950912  ;;  %v1784_v0 = vld [vmem:[#allocation5 + $0x40] sm:$0xff]   ;;  %v1788_v4 = vld [vmem:[#allocation5 + $0x48] sm:$0xff]  }
  0x28   :  { %v1785_v1 = vld [vmem:[#allocation5 + $0xc0] sm:$0xff]   ;;  %1600 = vmatprep.subr.bf16.mxu0 %v1784_v0  ;;  %v1789_v5 = vld [vmem:[#allocation5 + $0xc8] sm:$0xff]   ;;  %v1792_v8 = vld [vmem:[#allocation5 + $0x50] sm:$0xff]  }
  0x29   :  { %v1786_v2 = vld [vmem:[#allocation5] sm:$0xff]   ;;  %1622 = vmatprep.subr.bf16.mxu1 %v1785_v1  ;;  %v1790_v6 = vld [vmem:[#allocation5 + $0x8] sm:$0xff]   ;;  %v1793_v9 = vld [vmem:[#allocation5 + $0xd0] sm:$0xff]  }
  0x2a   :  { %v1787_v3 = vld [vmem:[#allocation5 + $0x80] sm:$0xff]   ;;  %1601 = vmatpush3.bf16.msra.mxu0 %v1786_v2  ;;  %v1791_v7 = vld [vmem:[#allocation5 + $0x88] sm:$0xff]   ;;  %v1794_v10 = vld [vmem:[#allocation5 + $0x10] sm:$0xff]  }
  0x2b   :  { %1623 = vmatpush3.bf16.msra.mxu1 %v1787_v3  ;;  %1602 = vmatprep.subr.bf16.mxu0 %v1788_v4  ;;  %v1795_v11 = vld [vmem:[#allocation5 + $0x90] sm:$0xff]   ;;  %v1796_v12 = vld [vmem:[#allocation5 + $0x58] sm:$0xff]   ;;  %v1800_v16 = vld [vmem:[#allocation5 + $0x60] sm:$0xff]  }
  0x2c   :  { %1624 = vmatprep.subr.bf16.mxu1 %v1789_v5  ;;  %v1797_v13 = vld [vmem:[#allocation5 + $0xd8] sm:$0xff]   ;;  %v1801_v17 = vld [vmem:[#allocation5 + $0xe0] sm:$0xff]   ;;  %v1804_v20 = vld [vmem:[#allocation5 + $0x68] sm:$0xff]  }
  0x2d   :  { %v1798_v14 = vld [vmem:[#allocation5 + $0x18] sm:$0xff]   ;;  %v1802_v18 = vld [vmem:[#allocation5 + $0x20] sm:$0xff]   ;;  %v1805_v21 = vld [vmem:[#allocation5 + $0xe8] sm:$0xff]  }
  0x2e   :  { %1603 = vmatpush3.bf16.msra.mxu0 %v1790_v6  ;;  %v1799_v15 = vld [vmem:[#allocation5 + $0x98] sm:$0xff]   ;;  %v1803_v19 = vld [vmem:[#allocation5 + $0xa0] sm:$0xff]   ;;  %v1806_v22 = vld [vmem:[#allocation5 + $0x28] sm:$0xff]  }
  0x2f   :  { %1625 = vmatpush3.bf16.msra.mxu1 %v1791_v7  ;;  %1604 = vmatprep.subr.bf16.mxu0 %v1792_v8  ;;  %v1807_v23 = vld [vmem:[#allocation5 + $0xa8] sm:$0xff]   ;;  %v1808_v24 = vld [vmem:[#allocation5 + $0x70] sm:$0xff]   ;;  %v1812_v28 = vld [vmem:[#allocation5 + $0x78] sm:$0xff]  }
  0x30   :  { %1626 = vmatprep.subr.bf16.mxu1 %v1793_v9  ;;  %v1809_v25 = vld [vmem:[#allocation5 + $0xf0] sm:$0xff]   ;;  %v1813_v29 = vld [vmem:[#allocation5 + $0xf8] sm:$0xff]   ;;  %v45_v32 = vld [vmem:[#allocation2 + $0x8] sm:$0xff] }
  0x31   :  { %v1810_v26 = vld [vmem:[#allocation5 + $0x30] sm:$0xff]   ;;  %v1814_v30 = vld [vmem:[#allocation5 + $0x38] sm:$0xff]   ;;  %v61_v33 = vld [vmem:[#allocation2 + $0x88] sm:$0xff] }
  0x32   :  { %1605 = vmatpush3.bf16.msra.mxu0 %v1794_v10  ;;  %v1811_v27 = vld [vmem:[#allocation5 + $0xb0] sm:$0xff]   ;;  %v1815_v31 = vld [vmem:[#allocation5 + $0xb8] sm:$0xff]   ;;  %v77_v35 = vpack.c.bf16 %v61_v33, %v45_v32  ;;  %v44_v37 = vld [vmem:[#allocation2] sm:$0xff] }
  0x33   :  { %1627 = vmatpush3.bf16.msra.mxu1 %v1795_v11  ;;  %1606 = vmatprep.subr.bf16.mxu0 %v1796_v12  ;;  %v47_v34 = vld [vmem:[#allocation2 + $0x18] sm:$0xff]  ;;  %v60_v38 = vld [vmem:[#allocation2 + $0x80] sm:$0xff]  ;;  %v46_v41 = vld [vmem:[#allocation2 + $0x10] sm:$0xff] }
  0x34   :  { %1628 = vmatprep.subr.bf16.mxu1 %v1797_v13  ;;  %v63_v36 = vld [vmem:[#allocation2 + $0x98] sm:$0xff]  ;;  %v76_v40 = vpack.c.bf16 %v60_v38, %v44_v37  ;;  %v62_v42 = vld [vmem:[#allocation2 + $0x90] sm:$0xff]  ;;  %1155 = vmatprep.mubr.bf16.mxu0 %v77_v35  ;;  %v1816_v44 = vld [vmem:[#allocation5 + $0x140] sm:$0xff]  }
  0x35   :  { %v79_v39 = vpack.c.bf16 %v63_v36, %v47_v34  ;;  %v78_v43 = vpack.c.bf16 %v62_v42, %v46_v41  ;;  %v1817_v45 = vld [vmem:[#allocation5 + $0x1c0] sm:$0xff]   ;;  %v1820_v48 = vld [vmem:[#allocation5 + $0x148] sm:$0xff]   ;;  %v1824_v52 = vld [vmem:[#allocation5 + $0x150] sm:$0xff]  }
  0x36   :  { %1607 = vmatpush3.bf16.msra.mxu0 %v1798_v14  ;;  %v1818_v46 = vld [vmem:[#allocation5 + $0x100] sm:$0xff]   ;;  %v1821_v49 = vld [vmem:[#allocation5 + $0x1c8] sm:$0xff]   ;;  %v1825_v53 = vld [vmem:[#allocation5 + $0x1d0] sm:$0xff]  }
  0x37   :  { %1629 = vmatpush3.bf16.msra.mxu1 %v1799_v15  ;;  %1608 = vmatprep.subr.bf16.mxu0 %v1800_v16  ;;  %v1819_v47 = vld [vmem:[#allocation5 + $0x180] sm:$0xff]   ;;  %v1822_v50 = vld [vmem:[#allocation5 + $0x108] sm:$0xff]   ;;  %v1826_v54 = vld [vmem:[#allocation5 + $0x110] sm:$0xff]  }
  0x38   :  { %1630 = vmatprep.subr.bf16.mxu1 %v1801_v17  ;;  %1196 = vmatprep.mubr.bf16.mxu1 %v79_v39  ;;  %v1823_v51 = vld [vmem:[#allocation5 + $0x188] sm:$0xff]   ;;  %v1827_v55 = vld [vmem:[#allocation5 + $0x190] sm:$0xff]   ;;  %v1828_v56 = vld [vmem:[#allocation5 + $0x158] sm:$0xff]  }
  0x39   :  { %v1829_v57 = vld [vmem:[#allocation5 + $0x1d8] sm:$0xff]   ;;  %v1832_v60 = vld [vmem:[#allocation5 + $0x160] sm:$0xff]   ;;  %v1836_v0 = vld [vmem:[#allocation5 + $0x168] sm:$0xff]  }
  0x3a   :  { %1609 = vmatpush3.bf16.msra.mxu0 %v1802_v18  ;;  %v1830_v58 = vld [vmem:[#allocation5 + $0x118] sm:$0xff]   ;;  %v1833_v61 = vld [vmem:[#allocation5 + $0x1e0] sm:$0xff]   ;;  %v1837_v1 = vld [vmem:[#allocation5 + $0x1e8] sm:$0xff]  }
  0x3b   :  { %1631 = vmatpush3.bf16.msra.mxu1 %v1803_v19  ;;  %1610 = vmatprep.subr.bf16.mxu0 %v1804_v20  ;;  %v1831_v59 = vld [vmem:[#allocation5 + $0x198] sm:$0xff]   ;;  %v1834_v62 = vld [vmem:[#allocation5 + $0x120] sm:$0xff]   ;;  %v1838_v2 = vld [vmem:[#allocation5 + $0x128] sm:$0xff]  }
  0x3c   :  { %1632 = vmatprep.subr.bf16.mxu1 %v1805_v21  ;;  %v1835_v63 = vld [vmem:[#allocation5 + $0x1a0] sm:$0xff]   ;;  %v1839_v3 = vld [vmem:[#allocation5 + $0x1a8] sm:$0xff]   ;;  %v1840_v4 = vld [vmem:[#allocation5 + $0x170] sm:$0xff]  }
  0x3d   :  { %v1841_v5 = vld [vmem:[#allocation5 + $0x1f0] sm:$0xff]   ;;  %v1844_v8 = vld [vmem:[#allocation5 + $0x178] sm:$0xff]   ;;  %v49_v12 = vld [vmem:[#allocation2 + $0x28] sm:$0xff] }
  0x3e   :  { %1611 = vmatpush3.bf16.msra.mxu0 %v1806_v22  ;;  %v1842_v6 = vld [vmem:[#allocation5 + $0x130] sm:$0xff]   ;;  %v1845_v9 = vld [vmem:[#allocation5 + $0x1f8] sm:$0xff]   ;;  %v65_v13 = vld [vmem:[#allocation2 + $0xa8] sm:$0xff] }
  0x3f   :  { %1633 = vmatpush3.bf16.msra.mxu1 %v1807_v23  ;;  %1612 = vmatprep.subr.bf16.mxu0 %v1808_v24  ;;  %v1843_v7 = vld [vmem:[#allocation5 + $0x1b0] sm:$0xff]   ;;  %v1846_v10 = vld [vmem:[#allocation5 + $0x138] sm:$0xff]   ;;  %v81_v16 = vpack.c.bf16 %v65_v13, %v49_v12  ;;  %v48_v18 = vld [vmem:[#allocation2 + $0x20] sm:$0xff] }
  0x40   :  { %1634 = vmatprep.subr.bf16.mxu1 %v1809_v25  ;;  %v1847_v11 = vld [vmem:[#allocation5 + $0x1b8] sm:$0xff]   ;;  %v64_v19 = vld [vmem:[#allocation2 + $0xa0] sm:$0xff]  ;;  %v50_v20 = vld [vmem:[#allocation2 + $0x30] sm:$0xff] }
  0x41   :  { %v51_v14 = vld [vmem:[#allocation2 + $0x38] sm:$0xff]  ;;  %v80_v21 = vpack.c.bf16 %v64_v19, %v48_v18  ;;  %v66_v22 = vld [vmem:[#allocation2 + $0xb0] sm:$0xff]  ;;  %v1848_v24 = vld [vmem:[#allocation5 + $0x240] sm:$0xff]  }
  0x42   :  { %1613 = vmatpush3.bf16.msra.mxu0 %v1810_v26  ;;  %v67_v15 = vld [vmem:[#allocation2 + $0xb8] sm:$0xff]  ;;  %v82_v23 = vpack.c.bf16 %v66_v22, %v50_v20  ;;  %v1849_v25 = vld [vmem:[#allocation5 + $0x2c0] sm:$0xff]   ;;  %v1856_v32 = vld [vmem:[#allocation5 + $0x250] sm:$0xff]  }
  0x43   :  { %1635 = vmatpush3.bf16.msra.mxu1 %v1811_v27  ;;  %1614 = vmatprep.subr.bf16.mxu0 %v1812_v28  ;;  %v83_v17 = vpack.c.bf16 %v67_v15, %v51_v14  ;;  %v1850_v26 = vld [vmem:[#allocation5 + $0x200] sm:$0xff]   ;;  %v1852_v28 = vld [vmem:[#allocation5 + $0x248] sm:$0xff]   ;;  %v1857_v33 = vld [vmem:[#allocation5 + $0x2d0] sm:$0xff]  }
  0x44   :  { %1636 = vmatprep.subr.bf16.mxu1 %v1813_v29  ;;  %v1851_v27 = vld [vmem:[#allocation5 + $0x280] sm:$0xff]   ;;  %v1853_v29 = vld [vmem:[#allocation5 + $0x2c8] sm:$0xff]   ;;  %v1858_v34 = vld [vmem:[#allocation5 + $0x210] sm:$0xff]  }
  0x45   :  { %v1859_v35 = vld [vmem:[#allocation5 + $0x290] sm:$0xff]   ;;  %v1860_v36 = vld [vmem:[#allocation5 + $0x258] sm:$0xff]   ;;  %v1865_v41 = vld [vmem:[#allocation5 + $0x2e0] sm:$0xff]  }
  0x46   :  { %1615 = vmatpush3.bf16.msra.mxu0 %v1814_v30  ;;  %v1854_v30 = vld [vmem:[#allocation5 + $0x208] sm:$0xff]   ;;  %v1861_v37 = vld [vmem:[#allocation5 + $0x2d8] sm:$0xff]   ;;  %v1866_v42 = vld [vmem:[#allocation5 + $0x220] sm:$0xff]  }
  0x47   :  { %1637 = vmatpush3.bf16.msra.mxu1 %v1815_v31  ;;  %1644 = vmatprep.subr.bf16.mxu0 %v1816_v44  ;;  %v1855_v31 = vld [vmem:[#allocation5 + $0x288] sm:$0xff]   ;;  %v1862_v38 = vld [vmem:[#allocation5 + $0x218] sm:$0xff]   ;;  %v1888_v12 = vld [vmem:[#allocation5 + $0x350] sm:$0xff]  }
  0x48   :  { %1666 = vmatprep.subr.bf16.mxu1 %v1817_v45  ;;  %v1863_v39 = vld [vmem:[#allocation5 + $0x298] sm:$0xff]   ;;  %v1868_v44 = vld [vmem:[#allocation5 + $0x268] sm:$0xff]   ;;  %v1889_v13 = vld [vmem:[#allocation5 + $0x3d0] sm:$0xff]  }
  0x49   :  { %1156 = vmatmul.mubr.bf16.vlgmr.msra.gmra.mrb[0].mxu0 %v76_v40  ;;  %v1864_v40 = vld [vmem:[#allocation5 + $0x260] sm:$0xff]   ;;  %v1869_v45 = vld [vmem:[#allocation5 + $0x2e8] sm:$0xff]   ;;  %v1890_v14 = vld [vmem:[#allocation5 + $0x310] sm:$0xff]  }
  0x4a   :  { %1197 = vmatmul.mubr.bf16.vlgmr.msra.gmra.mrb[0].mxu1 %v78_v43  ;;  %1645 = vmatpush3.bf16.msra.mxu0 %v1818_v46  ;;  %v1867_v43 = vld [vmem:[#allocation5 + $0x2a0] sm:$0xff]   ;;  %v1870_v46 = vld [vmem:[#allocation5 + $0x228] sm:$0xff]   ;;  %v1891_v15 = vld [vmem:[#allocation5 + $0x390] sm:$0xff]  }
  0x4b   :  { %1667 = vmatpush3.bf16.msra.mxu1 %v1819_v47  ;;  %1646 = vmatprep.subr.bf16.mxu0 %v1820_v48  ;;  %v1871_v47 = vld [vmem:[#allocation5 + $0x2a8] sm:$0xff]   ;;  %v1872_v48 = vld [vmem:[#allocation5 + $0x270] sm:$0xff]   ;;  %v1894_v18 = vld [vmem:[#allocation5 + $0x318] sm:$0xff]  }
  0x4c   :  { %1668 = vmatprep.subr.bf16.mxu1 %v1821_v49  ;;  %1237 = vmatprep.mubr.bf16.mxu0 %v81_v16  ;;  %v1873_v49 = vld [vmem:[#allocation5 + $0x2f0] sm:$0xff]   ;;  %v1892_v16 = vld [vmem:[#allocation5 + $0x358] sm:$0xff]   ;;  %v1896_v20 = vld [vmem:[#allocation5 + $0x360] sm:$0xff]  }
  0x4d   :  { %1278 = vmatprep.mubr.bf16.mxu1 %v83_v17  ;;  %v1893_v17 = vld [vmem:[#allocation5 + $0x3d8] sm:$0xff]   ;;  %v1898_v22 = vld [vmem:[#allocation5 + $0x320] sm:$0xff]  }
  0x4e   :  { %1647 = vmatpush3.bf16.msra.mxu0 %v1822_v50  ;;  %v1874_v50 = vld [vmem:[#allocation5 + $0x230] sm:$0xff]   ;;  %v1895_v19 = vld [vmem:[#allocation5 + $0x398] sm:$0xff]  }
  0x4f   :  { %1669 = vmatpush3.bf16.msra.mxu1 %v1823_v51  ;;  %1648 = vmatprep.subr.bf16.mxu0 %v1824_v52  ;;  %v1875_v51 = vld [vmem:[#allocation5 + $0x2b0] sm:$0xff]   ;;  %v1876_v52 = vld [vmem:[#allocation5 + $0x278] sm:$0xff]  }
  0x50   :  { %1670 = vmatprep.subr.bf16.mxu1 %v1825_v53  ;;  %v1877_v53 = vld [vmem:[#allocation5 + $0x2f8] sm:$0xff]  }
  0x52   :  { %1649 = vmatpush3.bf16.msra.mxu0 %v1826_v54  ;;  %v1878_v54 = vld [vmem:[#allocation5 + $0x238] sm:$0xff]  }
  0x53   :  { %1671 = vmatpush3.bf16.msra.mxu1 %v1827_v55  ;;  %1650 = vmatprep.subr.bf16.mxu0 %v1828_v56  ;;  %v1879_v55 = vld [vmem:[#allocation5 + $0x2b8] sm:$0xff]   ;;  %v53_v56 = vld [vmem:[#allocation2 + $0x48] sm:$0xff] }
  0x54   :  { %1672 = vmatprep.subr.bf16.mxu1 %v1829_v57  ;;  %v69_v57 = vld [vmem:[#allocation2 + $0xc8] sm:$0xff] }
  0x56   :  { %1651 = vmatpush3.bf16.msra.mxu0 %v1830_v58  ;;  %v85_v58 = vpack.c.bf16 %v69_v57, %v53_v56 }
  0x57   :  { %1673 = vmatpush3.bf16.msra.mxu1 %v1831_v59  ;;  %1652 = vmatprep.subr.bf16.mxu0 %v1832_v60  ;;  %v55_v59 = vld [vmem:[#allocation2 + $0x58] sm:$0xff] }
  0x58   :  { %1674 = vmatprep.subr.bf16.mxu1 %v1833_v61  ;;  %v71_v60 = vld [vmem:[#allocation2 + $0xd8] sm:$0xff]  ;;  %v52_v61 = vld [vmem:[#allocation2 + $0x40] sm:$0xff] }
  0x5a   :  { %1653 = vmatpush3.bf16.msra.mxu0 %v1834_v62  ;;  %v87_v62 = vpack.c.bf16 %v71_v60, %v55_v59 }
  0x5b   :  { %1675 = vmatpush3.bf16.msra.mxu1 %v1835_v63  ;;  %1654 = vmatprep.subr.bf16.mxu0 %v1836_v0  ;;  %v68_v63 = vld [vmem:[#allocation2 + $0xc0] sm:$0xff]  ;;  %v54_v0 = vld [vmem:[#allocation2 + $0x50] sm:$0xff] }
  0x5c   :  { %1676 = vmatprep.subr.bf16.mxu1 %v1837_v1  ;;  %v70_v1 = vld [vmem:[#allocation2 + $0xd0] sm:$0xff] }
  0x5e   :  { %1655 = vmatpush3.bf16.msra.mxu0 %v1838_v2  ;;  %v84_v2 = vpack.c.bf16 %v68_v63, %v52_v61 }
  0x5f   :  { %1677 = vmatpush3.bf16.msra.mxu1 %v1839_v3  ;;  %1656 = vmatprep.subr.bf16.mxu0 %v1840_v4  ;;  %v86_v3 = vpack.c.bf16 %v70_v1, %v54_v0  ;;  %v1880_v4 = vld [vmem:[#allocation5 + $0x340] sm:$0xff]  }
  0x60   :  { %1678 = vmatprep.subr.bf16.mxu1 %v1841_v5  ;;  %v1881_v5 = vld [vmem:[#allocation5 + $0x3c0] sm:$0xff]  }
  0x62   :  { %1657 = vmatpush3.bf16.msra.mxu0 %v1842_v6  ;;  %v1882_v6 = vld [vmem:[#allocation5 + $0x300] sm:$0xff]  }
  0x63   :  { %1679 = vmatpush3.bf16.msra.mxu1 %v1843_v7  ;;  %1658 = vmatprep.subr.bf16.mxu0 %v1844_v8  ;;  %v1883_v7 = vld [vmem:[#allocation5 + $0x380] sm:$0xff]   ;;  %v1884_v8 = vld [vmem:[#allocation5 + $0x348] sm:$0xff]  }
  0x64   :  { %1680 = vmatprep.subr.bf16.mxu1 %v1845_v9  ;;  %v1885_v9 = vld [vmem:[#allocation5 + $0x3c8] sm:$0xff]  }
  0x66   :  { %1659 = vmatpush3.bf16.msra.mxu0 %v1846_v10  ;;  %v1886_v10 = vld [vmem:[#allocation5 + $0x308] sm:$0xff]  }
  0x67   :  { %1681 = vmatpush3.bf16.msra.mxu1 %v1847_v11  ;;  %1688 = vmatprep.subr.bf16.mxu0 %v1848_v24  ;;  %v1887_v11 = vld [vmem:[#allocation5 + $0x388] sm:$0xff]  }
  0x68   :  { %1710 = vmatprep.subr.bf16.mxu1 %v1849_v25  ;;  %v1900_v24 = vld [vmem:[#allocation5 + $0x368] sm:$0xff]  }
  0x69   :  { %1238 = vmatmul.mubr.bf16.vlgmr.msra.gmra.mrb[4].mxu0 %v80_v21  ;;  %v1897_v21 = vld [vmem:[#allocation5 + $0x3e0] sm:$0xff]   ;;  %v1901_v25 = vld [vmem:[#allocation5 + $0x3e8] sm:$0xff]  }
  0x6a   :  { %1279 = vmatmul.mubr.bf16.vlgmr.msra.gmra.mrb[4].mxu1 %v82_v23  ;;  %1689 = vmatpush3.bf16.msra.mxu0 %v1850_v26  ;;  %v1899_v23 = vld [vmem:[#allocation5 + $0x3a0] sm:$0xff]   ;;  %v1902_v26 = vld [vmem:[#allocation5 + $0x328] sm:$0xff]  }
  0x6b   :  { %1711 = vmatpush3.bf16.msra.mxu1 %v1851_v27  ;;  %1690 = vmatprep.subr.bf16.mxu0 %v1852_v28  ;;  %v1903_v27 = vld [vmem:[#allocation5 + $0x3a8] sm:$0xff]   ;;  %v1904_v28 = vld [vmem:[#allocation5 + $0x370] sm:$0xff]  }
  0x6c   :  { %1712 = vmatprep.subr.bf16.mxu1 %v1853_v29  ;;  %1319 = vmatprep.mubr.bf16.mxu0 %v85_v58  ;;  %v1905_v29 = vld [vmem:[#allocation5 + $0x3f0] sm:$0xff]  }
  0x6d   :  { %1360 = vmatprep.mubr.bf16.mxu1 %v87_v62 }
  0x6e   :  { %1691 = vmatpush3.bf16.msra.mxu0 %v1854_v30  ;;  %v1906_v30 = vld [vmem:[#allocation5 + $0x330] sm:$0xff]  }
  0x6f   :  { %1713 = vmatpush3.bf16.msra.mxu1 %v1855_v31  ;;  %1692 = vmatprep.subr.bf16.mxu0 %v1856_v32  ;;  %v1907_v31 = vld [vmem:[#allocation5 + $0x3b0] sm:$0xff]   ;;  %v1908_v32 = vld [vmem:[#allocation5 + $0x378] sm:$0xff]  }
  0x70   :  { %1714 = vmatprep.subr.bf16.mxu1 %v1857_v33  ;;  %v1909_v33 = vld [vmem:[#allocation5 + $0x3f8] sm:$0xff]  }
  0x72   :  { %1693 = vmatpush3.bf16.msra.mxu0 %v1858_v34  ;;  %v1910_v34 = vld [vmem:[#allocation5 + $0x338] sm:$0xff]  }
  0x73   :  { %1715 = vmatpush3.bf16.msra.mxu1 %v1859_v35  ;;  %1694 = vmatprep.subr.bf16.mxu0 %v1860_v36  ;;  %v1911_v35 = vld [vmem:[#allocation5 + $0x3b8] sm:$0xff]   ;;  %v57_v36 = vld [vmem:[#allocation2 + $0x68] sm:$0xff] }
  0x74   :  { %1716 = vmatprep.subr.bf16.mxu1 %v1861_v37  ;;  %v73_v37 = vld [vmem:[#allocation2 + $0xe8] sm:$0xff] }
  0x76   :  { %1695 = vmatpush3.bf16.msra.mxu0 %v1862_v38  ;;  %v59_v38 = vld [vmem:[#allocation2 + $0x78] sm:$0xff] }
  0x77   :  { %1717 = vmatpush3.bf16.msra.mxu1 %v1863_v39  ;;  %1696 = vmatprep.subr.bf16.mxu0 %v1864_v40  ;;  %v89_v39 = vpack.c.bf16 %v73_v37, %v57_v36  ;;  %v75_v40 = vld [vmem:[#allocation2 + $0xf8] sm:$0xff] }
  0x78   :  { %1718 = vmatprep.subr.bf16.mxu1 %v1865_v41  ;;  %v56_v41 = vld [vmem:[#allocation2 + $0x60] sm:$0xff] }
  0x7a   :  { %1697 = vmatpush3.bf16.msra.mxu0 %v1866_v42  ;;  %v72_v42 = vld [vmem:[#allocation2 + $0xe0] sm:$0xff] }
  0x7b   :  { %1719 = vmatpush3.bf16.msra.mxu1 %v1867_v43  ;;  %1698 = vmatprep.subr.bf16.mxu0 %v1868_v44  ;;  %v91_v43 = vpack.c.bf16 %v75_v40, %v59_v38  ;;  %v88_v44 = vpack.c.bf16 %v72_v42, %v56_v41 }
  0x7c   :  { %1720 = vmatprep.subr.bf16.mxu1 %v1869_v45  ;;  %v58_v45 = vld [vmem:[#allocation2 + $0x70] sm:$0xff] }
  0x7e   :  { %1699 = vmatpush3.bf16.msra.mxu0 %v1870_v46  ;;  %v74_v46 = vld [vmem:[#allocation2 + $0xf0] sm:$0xff] }
  0x7f   :  { %1721 = vmatpush3.bf16.msra.mxu1 %v1871_v47  ;;  %1700 = vmatprep.subr.bf16.mxu0 %v1872_v48  ;;  %v90_v47 = vpack.c.bf16 %v74_v46, %v58_v45 }
  0x80   :  { %1722 = vmatprep.subr.bf16.mxu1 %v1873_v49 }
  0x82   :  { %1701 = vmatpush3.bf16.msra.mxu0 %v1874_v50  ;;  %v1471_v50 = vld [vmem:[%s2056_s2] ss:$0 sm:$0xff]  ;;  %s1990_s2 = smov [#allocation7]  }
  0x83   :  { %1723 = vmatpush3.bf16.msra.mxu1 %v1875_v51  ;;  %1702 = vmatprep.subr.bf16.mxu0 %v1876_v52  ;;  %s1458_s13 = sshll.u32 %s1990_s2, 4  ;;  %s1459_s13 = int_to_ptr.vmem [resolvable:$true] %s1458_s13 }
  0x84   :  { %1724 = vmatprep.subr.bf16.mxu1 %v1877_v53  ;;  %s1956_s14 = scalar_lea.vmem %s1459_s13, 256  ;;  %p1961_p3 = scmp.lt.s32.totalorder %s1459_s13, %s1459_s13 }
  0x85   :  { %p1957_p2 = scmp.ne.s32.totalorder %s1459_s13, %s1956_s14  ;;  %p1962_p4 = scmp.lt.s32.totalorder %s1956_s14, %s1956_s14 }
  0x86   :  { %1703 = vmatpush3.bf16.msra.mxu0 %v1878_v54 }
  0x87   :  { %1725 = vmatpush3.bf16.msra.mxu1 %v1879_v55  ;;  %1732 = vmatprep.subr.bf16.mxu0 %v1880_v4  ;;  %p1963_p5 = por %p1962_p4, %p1961_p3 }
  0x88   :  { %1754 = vmatprep.subr.bf16.mxu1 %v1881_v5 }
  0x89   :  { %1320 = vmatmul.mubr.bf16.vlgmr.msra.gmra.mrb[8].mxu0 %v84_v2  ;;  %p1964_p6 = pnand %p1963_p5, %p1957_p2 }
  0x8a   :  { %1361 = vmatmul.mubr.bf16.vlgmr.msra.gmra.mrb[8].mxu1 %v86_v3  ;;  %1733 = vmatpush3.bf16.msra.mxu0 %v1882_v6 }
  0x8b   :  { %1755 = vmatpush3.bf16.msra.mxu1 %v1883_v7  ;;  %1734 = vmatprep.subr.bf16.mxu0 %v1884_v8 }
  0x8c   :  { %1756 = vmatprep.subr.bf16.mxu1 %v1885_v9  ;;  %1401 = vmatprep.mubr.bf16.mxu0 %v89_v39 }
  0x8d   :  { %1442 = vmatprep.mubr.bf16.mxu1 %v91_v43 }
  0x8e   :  { %1735 = vmatpush3.bf16.msra.mxu0 %v1886_v10 }
  0x8f   :  { %1757 = vmatpush3.bf16.msra.mxu1 %v1887_v11  ;;  %1736 = vmatprep.subr.bf16.mxu0 %v1888_v12 }
  0x90   :  { %1758 = vmatprep.subr.bf16.mxu1 %v1889_v13 }
  0x92   :  { %1737 = vmatpush3.bf16.msra.mxu0 %v1890_v14 }
  0x93   :  { %1759 = vmatpush3.bf16.msra.mxu1 %v1891_v15  ;;  %1738 = vmatprep.subr.bf16.mxu0 %v1892_v16 }
  0x94   :  { %1760 = vmatprep.subr.bf16.mxu1 %v1893_v17 }
  0x96   :  { %1739 = vmatpush3.bf16.msra.mxu0 %v1894_v18 }
  0x97   :  { %1761 = vmatpush3.bf16.msra.mxu1 %v1895_v19  ;;  %1740 = vmatprep.subr.bf16.mxu0 %v1896_v20 }
  0x98   :  { %1762 = vmatprep.subr.bf16.mxu1 %v1897_v21 }
  0x9a   :  { %1741 = vmatpush3.bf16.msra.mxu0 %v1898_v22 }
  0x9b   :  { %1763 = vmatpush3.bf16.msra.mxu1 %v1899_v23  ;;  %1742 = vmatprep.subr.bf16.mxu0 %v1900_v24 }
  0x9c   :  { %1764 = vmatprep.subr.bf16.mxu1 %v1901_v25 }
  0x9e   :  { %1743 = vmatpush3.bf16.msra.mxu0 %v1902_v26 }
  0x9f   :  { %1765 = vmatpush3.bf16.msra.mxu1 %v1903_v27  ;;  %1744 = vmatprep.subr.bf16.mxu0 %v1904_v28 }
  0xa0   :  { %1766 = vmatprep.subr.bf16.mxu1 %v1905_v29 }
  0xa2   :  { %1745 = vmatpush3.bf16.msra.mxu0 %v1906_v30 }
  0xa3   :  { %1767 = vmatpush3.bf16.msra.mxu1 %v1907_v31  ;;  %1746 = vmatprep.subr.bf16.mxu0 %v1908_v32 }
  0xa4   :  { %1768 = vmatprep.subr.bf16.mxu1 %v1909_v33 }
  0xa6   :  { %1747 = vmatpush3.bf16.msra.mxu0 %v1910_v34 }
  0xa7   :  { %1769 = vmatpush3.bf16.msra.mxu1 %v1911_v35 }
  0xa9   :  { %1402 = vmatmul.mubr.bf16.vlgmr.msra.gmra.mrb[12].mxu0 %v88_v44 }
  0xaa   :  { %1443 = vmatmul.mubr.bf16.vlgmr.msra.gmra.mrb[12].mxu1 %v90_v47 }
 0x11c   :  { %v1616_v48 = vpop.f32.mrb[0].mxu0 }
 0x11d   :  { %v1638_v49 = vpop.f32.mrb[0].mxu1  ;;  %v1617_v51 = vpop.f32.mrb[1].mxu0 }
 0x11e   :  { %v1618_v52 = vadd.f32 %v1617_v51, %v1616_v48  ;;  %v1639_v53 = vpop.f32.mrb[1].mxu1  ;;  %v1619_v54 = vpop.f32.mrb[2].mxu0 }
 0x11f   :  { %v1640_v55 = vadd.f32 %v1639_v53, %v1638_v49  ;;  %v1641_v56 = vpop.f32.mrb[2].mxu1  ;;  %v1620_v57 = vpop.f32.mrb[3].mxu0 }
 0x120   :  { %v1158_v58 = vadd.f32 %v1618_v52, %v1471_v50  ;;  %v1621_v59 = vadd.f32 %v1620_v57, %v1619_v54  ;;  %v1642_v60 = vpop.f32.mrb[3].mxu1 }
 0x121   :  { %v1643_v61 = vadd.f32 %v1642_v60, %v1641_v56 }
 0x122   :  { %v1199_v62 = vadd.f32 %v1640_v55, %v1158_v58  ;;  %v1161_v63 = vadd.f32 %v1621_v59, %v1471_v50 }
 0x124   :  { %v1202_v0 = vadd.f32 %v1643_v61, %v1161_v63 }
 0x13c   :  { %v1660_v1 = vpop.f32.mrb[4].mxu0 }
 0x13d   :  { %v1682_v2 = vpop.f32.mrb[4].mxu1  ;;  %v1661_v3 = vpop.f32.mrb[5].mxu0 }
 0x13e   :  { %v1662_v4 = vadd.f32 %v1661_v3, %v1660_v1  ;;  %v1683_v5 = vpop.f32.mrb[5].mxu1  ;;  %v1663_v6 = vpop.f32.mrb[6].mxu0 }
 0x13f   :  { %v1684_v7 = vadd.f32 %v1683_v5, %v1682_v2  ;;  %v1685_v8 = vpop.f32.mrb[6].mxu1  ;;  %v1664_v9 = vpop.f32.mrb[7].mxu0 }
 0x140   :  { %v1240_v10 = vadd.f32 %v1662_v4, %v1199_v62  ;;  %v1665_v11 = vadd.f32 %v1664_v9, %v1663_v6  ;;  %v1686_v12 = vpop.f32.mrb[7].mxu1 }
 0x141   :  { %v1687_v13 = vadd.f32 %v1686_v12, %v1685_v8 }
 0x142   :  { %v1281_v14 = vadd.f32 %v1684_v7, %v1240_v10  ;;  %v1243_v15 = vadd.f32 %v1665_v11, %v1202_v0 }
 0x144   :  { %v1284_v16 = vadd.f32 %v1687_v13, %v1243_v15 }
 0x15c   :  { %v1704_v17 = vpop.f32.mrb[8].mxu0 }
 0x15d   :  { %v1726_v18 = vpop.f32.mrb[8].mxu1  ;;  %v1705_v19 = vpop.f32.mrb[9].mxu0 }
 0x15e   :  { %v1727_v20 = vpop.f32.mrb[9].mxu1  ;;  %v1706_v21 = vadd.f32 %v1705_v19, %v1704_v17  ;;  %v1707_v23 = vpop.f32.mrb[10].mxu0 }
 0x15f   :  { %v1728_v22 = vadd.f32 %v1727_v20, %v1726_v18  ;;  %v1729_v24 = vpop.f32.mrb[10].mxu1  ;;  %v1708_v25 = vpop.f32.mrb[11].mxu0 }
 0x160   :  { %v1730_v26 = vpop.f32.mrb[11].mxu1  ;;  %v1322_v27 = vadd.f32 %v1706_v21, %v1281_v14  ;;  %v1709_v28 = vadd.f32 %v1708_v25, %v1707_v23 }
 0x161   :  { %v1731_v29 = vadd.f32 %v1730_v26, %v1729_v24 }
 0x162   :  { %v1363_v30 = vadd.f32 %v1728_v22, %v1322_v27  ;;  %v1325_v31 = vadd.f32 %v1709_v28, %v1284_v16 }
 0x164   :  { %v1366_v32 = vadd.f32 %v1731_v29, %v1325_v31 }
 0x17c   :  { %v1748_v33 = vpop.f32.mrb[12].mxu0 }
 0x17d   :  { %v1770_v34 = vpop.f32.mrb[12].mxu1  ;;  %v1749_v35 = vpop.f32.mrb[13].mxu0 }
 0x17e   :  { %v1750_v36 = vadd.f32 %v1749_v35, %v1748_v33  ;;  %v1771_v37 = vpop.f32.mrb[13].mxu1  ;;  %v1751_v38 = vpop.f32.mrb[14].mxu0 }
 0x17f   :  { %v1772_v39 = vadd.f32 %v1771_v37, %v1770_v34  ;;  %v1773_v40 = vpop.f32.mrb[14].mxu1  ;;  %v1752_v41 = vpop.f32.mrb[15].mxu0 }
 0x180   :  { %v1404_v42 = vadd.f32 %v1750_v36, %v1363_v30  ;;  %v1753_v43 = vadd.f32 %v1752_v41, %v1751_v38  ;;  %v1774_v44 = vpop.f32.mrb[15].mxu1 }
 0x181   :  { %v1775_v45 = vadd.f32 %v1774_v44, %v1773_v40 }
 0x182   :  { %v1445_v46 = vadd.f32 %v1772_v39, %v1404_v42  ;;  %v1407_v47 = vadd.f32 %v1753_v43, %v1366_v32 }
 0x184   :  { %1451 = vst [vmem:[#allocation7] sm:$0xff] %v1445_v46  ;;  %v1448_v48 = vadd.f32 %v1775_v45, %v1407_v47 }
 0x186   :  { %1452 = vst [vmem:[#allocation7 + $0x8] sm:$0xff] %v1448_v48 }
 0x187   :  { %1967 = shalt.err (!%p1964_p6)
}
 0x188   :  { %s1968_s17 = scalar_lea.hbm %s2057_s3, 256 }
 0x189   :  { %p1969_p7 = scmp.ne.s32.totalorder %s2057_s3, %s1968_s17  ;;  %p1972_p8 = scmp.lt.u32.totalorder %s1968_s17, %s2057_s3 }
 0x18b   :  { %p1974_p9 = pnand %p1972_p8, %p1969_p7 }
 0x18d   :  { %1977 = shalt.err (!%p1974_p9)
}
 0x18e   :  { %s1991_s22 = smov 8  }
 0x18f   :  { %1464 = dma.vmem_to_hbm [thread:$0]  %s1459_s13, 256, %s2057_s3, [#allocation4], %s1986_s23, %s1986_s23, %s1991_s22  }
 0x190   :  { %1982 = dma.done.wait [#allocation4], 256  }
 0x191   :  { %1983 = vsyncadd [#allocation4], 4294967040 }
 0x192   :  { %1468 = vsyncpa [#allocation3], 1 }
 0x193   :  { %1469 = vsyncpa [#allocation6], 1 }
 0x194   :  { %1470 = vsyncpa [#allocation4], 1 }

</bundles_post_ra>
